<compile_context>
chip_gen: v6e
topology: v6e:2x2x1
jax: 0.10.0
libtpu: 0.0.40
codegen_flags: <defaults>
</compile_context>

<pallas_src>
import functools
import math

import jax
import jax.numpy as jnp
import numpy as np
from jax.experimental import pallas as pl
from jax.experimental.pallas import tpu as pltpu

_EPS_F32 = float(np.finfo(np.float32).eps)   # torch.nn.RMSNorm(eps=None) with f32 inputs
_LN_EPS = 1e-5                               # TransformerEncoderLayer layer_norm_eps default
_INV_SQRT2 = 0.7071067811865476
_LANE = 128
_SUBLANE = 8
_ASCAN_PATTERN = "CCCTCCTTCTTT"              # C(), C(), C(), T(), C(), C(), T(), T(), C(), T(), T(), T()


def _round_up(a, b):
    return (a + b - 1) // b * b


@functools.lru_cache(maxsize=1)
def _vmem_limit_bytes():
    """Per-generation scoped-VMEM budget (v5e/v6e: 128 MiB physical, v7x: 64 MiB)."""
    phys = None
    try:
        phys = getattr(pltpu.get_tpu_info(), "vmem_capacity_bytes", None)
    except Exception:
        phys = None
    if not phys:
        phys = 64 * 1024 * 1024          # conservative fallback: v7x physical VMEM / TC
    return int(min(phys // 2, 64 * 1024 * 1024))


def _pick_tile_rows(rows, f_pad, itemsize):
    """Largest row tile whose double-buffered in+out (+f32 temps) fits ~70% of the budget."""
    per_row = f_pad * (4 * itemsize + 2 * 4)   # 2x(in+out) buffers + ~2 f32 temporaries
    budget = int(0.7 * _vmem_limit_bytes())
    cap = max(_SUBLANE, (budget // max(per_row, 1)) // _SUBLANE * _SUBLANE)
    cap = min(cap, 4096)
    return max(_SUBLANE, min(cap, _round_up(rows, _SUBLANE)))


def _pad2(x2, r_pad, f_pad):
    r, f = x2.shape
    if r == r_pad and f == f_pad:
        return x2
    return jnp.pad(x2, ((0, r_pad - r), (0, f_pad - f)))


# ----------------------------- Pallas kernels -----------------------------

def _rmsnorm_kernel(x_ref, w_ref, o_ref, *, eps, inv_f, apply_gelu):
    x = x_ref[...].astype(jnp.float32)
    # zero-padded feature columns contribute 0; divide by the true feature count.
    ms = jnp.sum(x * x, axis=-1, keepdims=True) * inv_f
    inv_rms = jax.lax.rsqrt(ms + eps)
    y = x * inv_rms * w_ref[...].astype(jnp.float32)
    if apply_gelu:   # exact GELU (PyTorch approximate='none')
        y = 0.5 * y * (1.0 + jax.lax.erf(y * _INV_SQRT2))
    o_ref[...] = y.astype(o_ref.dtype)


def _layernorm_kernel(x_ref, w_ref, b_ref, o_ref, *, eps, inv_f):
    x = x_ref[...].astype(jnp.float32)
    mean = jnp.sum(x, axis=-1, keepdims=True) * inv_f
    var = jnp.sum(x * x, axis=-1, keepdims=True) * inv_f - mean * mean
    inv_std = jax.lax.rsqrt(var + eps)
    y = (x - mean) * inv_std * w_ref[...].astype(jnp.float32) + b_ref[...].astype(jnp.float32)
    o_ref[...] = y.astype(o_ref.dtype)


def _matmul_kernel(a_ref, b_ref, o_ref, acc_ref):
    @pl.when(pl.program_id(2) == 0)
    def _():
        acc_ref[...] = jnp.zeros_like(acc_ref)

    acc_ref[...] += jnp.dot(a_ref[...], b_ref[...], preferred_element_type=jnp.float32)

    @pl.when(pl.program_id(2) == pl.num_programs(2) - 1)
    def _():
        o_ref[...] = acc_ref[...].astype(o_ref.dtype)


# ----------------------------- Pallas wrappers -----------------------------

def _rowwise_call(kernel, x2, params, out_dtype):
    """Run a row-wise normalization kernel over a (rows, features) view."""
    R, F = x2.shape
    F_pad = _round_up(F, _LANE)                      # lane-dense feature axis
    tile_rows = _pick_tile_rows(R, F_pad, x2.dtype.itemsize)
    R_pad = _round_up(R, tile_rows)                  # pad rows instead of asserting
    xp = _pad2(x2, R_pad, F_pad)
    pads = [_pad2(p.reshape(1, F), 1, F_pad) for p in params]

    in_specs = [pl.BlockSpec((tile_rows, F_pad), lambda i: (i, 0))]
    in_specs += [pl.BlockSpec((1, F_pad), lambda i: (0, 0)) for _ in pads]  # VMEM-resident

    out = pl.pallas_call(
        kernel,
        out_shape=jax.ShapeDtypeStruct((R_pad, F_pad), out_dtype),
        grid_spec=pltpu.PrefetchScalarGridSpec(
            num_scalar_prefetch=0,
            grid=(R_pad // tile_rows,),
            in_specs=in_specs,
            out_specs=pl.BlockSpec((tile_rows, F_pad), lambda i: (i, 0)),
        ),
        compiler_params=pltpu.CompilerParams(
            dimension_semantics=("parallel",),        # v7x: shard row tiles over 2 TCs
            vmem_limit_bytes=_vmem_limit_bytes(),
        ),
    )(xp, *pads)
    if R_pad != R or F_pad != F:
        out = out[:R, :F]
    return out


def rmsnorm2d(x, weight, *, apply_gelu, eps=_EPS_F32):
    """torch.nn.RMSNorm((C, S)) [+ GELU] applied to x of shape (B, C, S)."""
    B, C, S = x.shape
    kernel = functools.partial(_rmsnorm_kernel, eps=eps, inv_f=1.0 / (C * S),
                               apply_gelu=apply_gelu)
    out = _rowwise_call(kernel, x.reshape(B, C * S), [weight.reshape(-1)], x.dtype)
    return out.reshape(B, C, S)


def layernorm_lastdim(x, weight, bias, *, eps=_LN_EPS):
    lead, E = x.shape[:-1], x.shape[-1]
    kernel = functools.partial(_layernorm_kernel, eps=eps, inv_f=1.0 / E)
    out = _rowwise_call(kernel, x.reshape(-1, E), [weight, bias], x.dtype)
    return out.reshape(*lead, E)


def pallas_matmul(a, b):
    """a @ b with f32 MXU accumulation; pads to TPU tile multiples and slices back."""
    M, K = a.shape
    K2, N = b.shape
    assert K == K2
    tm = 256 if M >= 256 else _round_up(M, _SUBLANE)
    tn = 256 if N >= 256 else _round_up(N, _LANE)
    tk = 512 if K >= 512 else _round_up(K, _LANE)
    M_pad, K_pad, N_pad = _round_up(M, tm), _round_up(K, tk), _round_up(N, tn)
    ap = _pad2(a, M_pad, K_pad)
    bp = _pad2(b, K_pad, N_pad)
    out = pl.pallas_call(
        _matmul_kernel,
        out_shape=jax.ShapeDtypeStruct((M_pad, N_pad), a.dtype),
        grid_spec=pltpu.PrefetchScalarGridSpec(
            num_scalar_prefetch=0,
            grid=(M_pad // tm, N_pad // tn, K_pad // tk),
            in_specs=[pl.BlockSpec((tm, tk), lambda i, j, k: (i, k)),
                      pl.BlockSpec((tk, tn), lambda i, j, k: (k, j))],
            out_specs=pl.BlockSpec((tm, tn), lambda i, j, k: (i, j)),
            scratch_shapes=[pltpu.VMEM((tm, tn), jnp.float32)],
        ),
        compiler_params=pltpu.CompilerParams(
            dimension_semantics=("parallel", "parallel", "arbitrary"),
            vmem_limit_bytes=_vmem_limit_bytes(),
        ),
    )(ap, bp)
    if M_pad != M or N_pad != N:
        out = out[:M, :N]
    return out


# ----------------------------- model pieces (glue in jnp) -----------------------------

def conv1x1(x, w, b=None):
    """Conv1d(kernel_size=1): x (B, Cin, S), w (Cout, Cin), b (Cout,) or None."""
    B, Cin, S = x.shape
    Cout = w.shape[0]
    y = pallas_matmul(x.transpose(0, 2, 1).reshape(B * S, Cin), w.T)
    if b is not None:
        y = y + b[None, :]
    return y.reshape(B, S, Cout).transpose(0, 2, 1)


def depthwise_conv3(x, w):
    """Grouped Conv1d(k=3, pad=1, groups=C, bias=False): x (B, C, S), w (C, 3)."""
    xp = jnp.pad(x, ((0, 0), (0, 0), (1, 1)))
    return (w[None, :, 0, None] * xp[:, :, :-2]
            + w[None, :, 1, None] * xp[:, :, 1:-1]
            + w[None, :, 2, None] * xp[:, :, 2:])


def inverted_residual(x, p):
    shortcut = x                                        # in_dim == out_dim == embed_dim in AsCAN1D
    h = conv1x1(x, p["pw_exp_w"])                       # bias=False
    h = rmsnorm2d(h, p["pw_exp_norm_w"], apply_gelu=True)
    h = depthwise_conv3(h, p["dw_w"])                   # bias=False
    h = rmsnorm2d(h, p["dw_norm_w"], apply_gelu=True)
    h = conv1x1(h, p["pw_proj_w"])                      # bias=False
    h = rmsnorm2d(h, p["pw_proj_norm_w"], apply_gelu=False)
    h = h * p["gamma"][None, :, None]                   # LayerScale1D
    return h + shortcut


def _mha(x, p, nhead):
    B, S, E = x.shape
    dh = E // nhead
    qkv = pallas_matmul(x.reshape(B * S, E), p["in_proj_w"].T) + p["in_proj_b"][None, :]
    qkv = qkv.reshape(B, S, 3, nhead, dh)
    q = qkv[:, :, 0].transpose(0, 2, 1, 3)
    k = qkv[:, :, 1].transpose(0, 2, 1, 3)
    v = qkv[:, :, 2].transpose(0, 2, 1, 3)
    scores = jnp.einsum("bhqd,bhkd->bhqk", q, k) * (1.0 / math.sqrt(dh))
    attn = jax.nn.softmax(scores, axis=-1)
    ctx = jnp.einsum("bhqk,bhkd->bhqd", attn, v)
    ctx = ctx.transpose(0, 2, 1, 3).reshape(B * S, E)
    out = pallas_matmul(ctx, p["out_proj_w"].T) + p["out_proj_b"][None, :]
    return out.reshape(B, S, E)


def transformer_block(x, p, nhead):
    h = x.transpose(0, 2, 1)                            # 'b c s -> b s c'
    B, S, E = h.shape
    h = layernorm_lastdim(h + _mha(h, p, nhead), p["ln1_w"], p["ln1_b"])
    ff = pallas_matmul(h.reshape(B * S, E), p["lin1_w"].T) + p["lin1_b"][None, :]
    ff = jax.nn.gelu(ff, approximate=False)
    ff = pallas_matmul(ff, p["lin2_w"].T) + p["lin2_b"][None, :]
    h = layernorm_lastdim(h + ff.reshape(B, S, E), p["ln2_w"], p["ln2_b"])
    return h.transpose(0, 2, 1)                         # 'b s c -> b c s'


def wpt_analysis_one_level(x):
    # TODO(synk): the external `wpt` object's filters are undefined in the spec; an orthonormal
    # Haar analysis ((B,C,S) -> (B,2C,S/2), lo/hi stacked on channels) is used in its place.
    even, odd = x[:, :, 0::2], x[:, :, 1::2]
    s = 1.0 / math.sqrt(2.0)
    return jnp.concatenate([(even + odd) * s, (even - odd) * s], axis=1)


def wpt_forward(x, num_levels):
    for _ in range(num_levels):
        x = wpt_analysis_one_level(x)
    return x


def wavelet_pooling(x, plist):
    for p in plist:
        x = conv1x1(x, p["w"], p["b"])
        x = rmsnorm2d(x, p["norm_w"], apply_gelu=False)
        x = wpt_analysis_one_level(x)
    return x


def ascan_forward(x, p, nhead):
    h = conv1x1(x, p["stem_w"], p["stem_b"])
    h = rmsnorm2d(h, p["stem_norm_w"], apply_gelu=True)
    for kind, lp in zip(_ASCAN_PATTERN, p["layers"]):
        h = inverted_residual(h, lp) if kind == "C" else transformer_block(h, lp, nhead)
    return h


def tft_classifier_forward(x, params, cfg):
    h = wpt_forward(x, cfg["J"])                                            # self.wpt(x)
    h = ascan_forward(h, params["ascan"], cfg["embed_dim"] // cfg["dim_head"])
    h = wavelet_pooling(h, params["pool"])
    h = conv1x1(h, params["cls_w"], params["cls_b"])                        # classifier conv1x1
    return h.reshape(h.shape[0], -1)                                        # Flatten


# ----------------------------- parameter init -----------------------------

def init_params(key, cfg):
    E = cfg["embed_dim"]
    S = cfg["crop_size"] // (2 ** cfg["J"])
    in_dim = cfg["channels"] * (2 ** cfg["J"])
    exp = int(E * cfg["exp_ratio"])
    ff = int(cfg["exp_ratio"] * E)
    nlev = int(math.log2(cfg["crop_size"]) - cfg["J"])
    keys = iter(jax.random.split(key, 128))

    def w(shape, fan_in):
        return jax.random.normal(next(keys), shape, jnp.float32) * (1.0 / math.sqrt(fan_in))

    layers = []
    for kind in _ASCAN_PATTERN:
        if kind == "C":
            layers.append(dict(
                pw_exp_w=w((exp, E), E), pw_exp_norm_w=jnp.ones((exp, S), jnp.float32),
                dw_w=w((exp, 3), 3), dw_norm_w=jnp.ones((exp, S), jnp.float32),
                pw_proj_w=w((E, exp), exp), pw_proj_norm_w=jnp.ones((E, S), jnp.float32),
                gamma=jnp.full((E,), 1e-5, jnp.float32)))
        else:
            layers.append(dict(
                in_proj_w=w((3 * E, E), E), in_proj_b=jnp.zeros((3 * E,), jnp.float32),
                out_proj_w=w((E, E), E), out_proj_b=jnp.zeros((E,), jnp.float32),
                ln1_w=jnp.ones((E,), jnp.float32), ln1_b=jnp.zeros((E,), jnp.float32),
                lin1_w=w((ff, E), E), lin1_b=jnp.zeros((ff,), jnp.float32),
                lin2_w=w((E, ff), ff), lin2_b=jnp.zeros((E,), jnp.float32),
                ln2_w=jnp.ones((E,), jnp.float32), ln2_b=jnp.zeros((E,), jnp.float32)))
    ascan = dict(stem_w=w((E, in_dim), in_dim), stem_b=jnp.zeros((E,), jnp.float32),
                 stem_norm_w=jnp.ones((E, S), jnp.float32), layers=layers)

    pool, cur_s = [], S
    for _ in range(nlev):
        pool.append(dict(w=w((E // 2, E), E), b=jnp.zeros((E // 2,), jnp.float32),
                         norm_w=jnp.ones((E // 2, cur_s), jnp.float32)))
        cur_s //= 2

    return dict(ascan=ascan, pool=pool,
                cls_w=w((cfg["classifier_num_classes"], E), E),
                cls_b=jnp.zeros((cfg["classifier_num_classes"],), jnp.float32))


# ----------------------------- main -----------------------------

if __name__ == "__main__":
    cfg = dict(channels=4, J=2, crop_size=64, embed_dim=32, dim_head=8,
               exp_ratio=2.0, classifier_num_classes=5)
    key = jax.random.PRNGKey(0)
    k_x, k_p = jax.random.split(key)
    x = jax.random.normal(k_x, (2, cfg["channels"], cfg["crop_size"]), jnp.float32)
    params = init_params(k_p, cfg)

    # Kernel-level correctness spot checks against plain-JAX references.
    xt = jax.random.normal(jax.random.PRNGKey(1), (2, 32, 16), jnp.float32)
    wt = jax.random.normal(jax.random.PRNGKey(2), (32, 16), jnp.float32) * 0.1 + 1.0
    got = rmsnorm2d(xt, wt, apply_gelu=True)
    xf = xt.reshape(2, -1)
    ref = xf * jax.lax.rsqrt(jnp.mean(xf * xf, -1, keepdims=True) + _EPS_F32) * wt.reshape(1, -1)
    ref = 0.5 * ref * (1.0 + jax.lax.erf(ref * _INV_SQRT2))
    np.testing.assert_allclose(np.asarray(got), np.asarray(ref).reshape(2, 32, 16),
                               rtol=1e-5, atol=1e-5)

    a = jax.random.normal(jax.random.PRNGKey(3), (32, 48), jnp.float32)
    b = jax.random.normal(jax.random.PRNGKey(4), (48, 72), jnp.float32)
    ref_mm = np.asarray(a, np.float64) @ np.asarray(b, np.float64)
    np.testing.assert_allclose(np.asarray(pallas_matmul(a, b)), ref_mm, rtol=1e-4, atol=1e-3)

    fwd = jax.jit(lambda xx, pp: tft_classifier_forward(xx, pp, cfg))
    out = jax.block_until_ready(fwd(x, params))
    assert out.shape == (2, cfg["classifier_num_classes"]), out.shape
    assert bool(jnp.all(jnp.isfinite(out)))
    print("KERNEL_OK")
</pallas_src>

<mosaic_0001>
module attributes {stable_mosaic.version = 11 : i64} {
  func.func @_rmsnorm_kernel(%arg0: i32, %arg1: memref<8x512xf32, #tpu.memory_space<vmem>>, %arg2: memref<1x512xf32, #tpu.memory_space<vmem>>, %arg3: memref<8x512xf32, #tpu.memory_space<vmem>>) attributes {dimension_semantics = [#tpu.dimension_semantics<parallel>], iteration_bounds = array<i64: 1>, scalar_prefetch = 0 : i64, scratch_operands = 0 : i64, tpu.core_type = #tpu.core_type<tc>, window_params = [{transform_indices = @transform_0, window_bounds = array<i64: 8, 512>}, {pipeline_mode = #tpu.pipeline_mode<synchronous>, transform_indices = @transform_1, window_bounds = array<i64: 1, 512>}, {transform_indices = @transform_2, window_bounds = array<i64: 8, 512>}]} {
    %c0 = arith.constant 0 : index
    %c0_0 = arith.constant 0 : index
    %0 = vector.load %arg1[%c0, %c0_0] : memref<8x512xf32, #tpu.memory_space<vmem>>, vector<8x512xf32>
    %1 = arith.mulf %0, %0 : vector<8x512xf32>
    %cst = arith.constant dense<0.000000e+00> : vector<8xf32>
    %2 = vector.multi_reduction <add>, %1, %cst [1] : vector<8x512xf32> to vector<8xf32>
    %3 = vector.shape_cast %2 : vector<8xf32> to vector<8x1xf32>
    %cst_1 = arith.constant 0.001953125 : f32
    %4 = vector.broadcast %cst_1 : f32 to vector<8x1xf32>
    %5 = arith.mulf %3, %4 : vector<8x1xf32>
    %cst_2 = arith.constant 1.1920929E-7 : f32
    %6 = vector.broadcast %cst_2 : f32 to vector<8x1xf32>
    %7 = arith.addf %5, %6 : vector<8x1xf32>
    %8 = math.rsqrt %7 : vector<8x1xf32>
    %9 = vector.broadcast %8 : vector<8x1xf32> to vector<8x512xf32>
    %10 = arith.mulf %0, %9 : vector<8x512xf32>
    %c0_3 = arith.constant 0 : index
    %c0_4 = arith.constant 0 : index
    %11 = vector.load %arg2[%c0_3, %c0_4] : memref<1x512xf32, #tpu.memory_space<vmem>>, vector<1x512xf32>
    %12 = vector.broadcast %11 : vector<1x512xf32> to vector<8x512xf32>
    %13 = arith.mulf %10, %12 : vector<8x512xf32>
    %cst_5 = arith.constant 5.000000e-01 : f32
    %14 = vector.broadcast %cst_5 : f32 to vector<8x512xf32>
    %15 = arith.mulf %14, %13 : vector<8x512xf32>
    %cst_6 = arith.constant 0.707106769 : f32
    %16 = vector.broadcast %cst_6 : f32 to vector<8x512xf32>
    %17 = arith.mulf %13, %16 : vector<8x512xf32>
    %18 = math.erf %17 : vector<8x512xf32>
    %cst_7 = arith.constant 1.000000e+00 : f32
    %19 = vector.broadcast %cst_7 : f32 to vector<8x512xf32>
    %20 = arith.addf %19, %18 : vector<8x512xf32>
    %21 = arith.mulf %15, %20 : vector<8x512xf32>
    %c0_8 = arith.constant 0 : index
    %c0_9 = arith.constant 0 : index
    %22 = vector.load %arg3[%c0_8, %c0_9] : memref<8x512xf32, #tpu.memory_space<vmem>>, vector<8x512xf32>
    tpu.vector_store %arg3[%c0_8, %c0_9], %21 {strides = array<i32>} : memref<8x512xf32, #tpu.memory_space<vmem>>, vector<8x512xf32>,
    return
  }
  func.func @transform_0(%arg0: i32) -> (i32, i32) {
    %c0_i32 = arith.constant 0 : i32
    %c0_i32_0 = arith.constant 0 : i32
    return %arg0, %c0_i32 : i32, i32
  }
  func.func @transform_1(%arg0: i32) -> (i32, i32) {
    %c0_i32 = arith.constant 0 : i32
    %c0_i32_0 = arith.constant 0 : i32
    %c0_i32_1 = arith.constant 0 : i32
    return %c0_i32, %c0_i32_0 : i32, i32
  }
  func.func @transform_2(%arg0: i32) -> (i32, i32) {
    %c0_i32 = arith.constant 0 : i32
    %c0_i32_0 = arith.constant 0 : i32
    return %arg0, %c0_i32 : i32, i32
  }
}

</mosaic_0001>

<bundles_post_ra>
// kernel: tpu_custom_call.1
= control target key start
LH: loop header
LB: loop body
LE: loop exit
PB: predicated region body
PF: predicated region fallthrough
CT: control target
= control target key end

     0   :  { %7 = vsyncpa [#allocation3], 0  ;;  %s228_s0 = inlined_call_operand.hbm [shape: f32[8,512], index: 0, kind: input, shape index: {}]   ;;  %s229_s1 = inlined_call_operand.hbm [shape: f32[1,512], index: 1, kind: input, shape index: {}]   ;;  %s230_s2 = inlined_call_operand.hbm [shape: f32[8,512], index: 2, kind: output, shape index: {}]  }
   0x1   :  { %8 = vsyncpa [#allocation6], 0 }
   0x2   :  { %9 = vsyncpa [#allocation4], 0  ;;  %s201_s9 = smov [#allocation2]   ;;  %s202_s11 = smov [#allocation5]  }
   0x3   :  { %s16_s10 = sshll.u32 %s201_s9, 4  ;;  %s26_s12 = sshll.u32 %s202_s11, 4  ;;  %s17_s10 = int_to_ptr.vmem [resolvable:$true] %s16_s10  ;;  %s27_s12 = int_to_ptr.vmem [resolvable:$true] %s26_s12 }
   0x4   :  { %s143_s13 = scalar_lea.vmem %s17_s10, 512  ;;  %p148_p1 = scmp.lt.s32.totalorder %s17_s10, %s17_s10 }
   0x5   :  { %p144_p0 = scmp.ne.s32.totalorder %s17_s10, %s143_s13  ;;  %p149_p2 = scmp.lt.s32.totalorder %s143_s13, %s143_s13 }
   0x7   :  { %p150_p3 = por %p149_p2, %p148_p1 }
   0x9   :  { %p151_p4 = pnand %p150_p3, %p144_p0 }
   0xb   :  { %154 = shalt.err (!%p151_p4)
}
   0xc   :  { %19 = dma.hbm_to_vmem [thread:$0]  %s228_s0, 512, %s17_s10, [#allocation3]  }
   0xd   :  { %s163_s16 = scalar_lea.vmem %s27_s12, 64  ;;  %p168_p6 = scmp.lt.s32.totalorder %s27_s12, %s27_s12 }
   0xe   :  { %p164_p5 = scmp.ne.s32.totalorder %s27_s12, %s163_s16  ;;  %p169_p7 = scmp.lt.s32.totalorder %s163_s16, %s163_s16 }
  0x10   :  { %p170_p8 = por %p169_p7, %p168_p6 }
  0x12   :  { %p171_p9 = pnand %p170_p8, %p164_p5 }
  0x14   :  { %174 = shalt.err (!%p171_p9)
}
  0x15   :  { %29 = dma.hbm_to_vmem [thread:$0]  %s229_s1, 64, %s27_s12, [#allocation6]  }
  0x16   :  { %195 = dma.done.wait [#allocation3], 512  }
  0x17   :  { %196 = vsyncadd [#allocation3], 4294966784 }
  0x18   :  { %197 = dma.done.wait [#allocation6], 64  }
  0x19   :  { %198 = vsyncadd [#allocation6], 4294967232  ;;  %v36_v0 = vld [vmem:[#allocation2] sm:$0xff]  ;;  %v37_v1 = vld [vmem:[#allocation2 + $0x8] sm:$0xff]  ;;  %v58_v14 = vlaneseq  ;;  %s203_s0 = smov [#allocation7]  }
  0x1a   :  { %v38_v2 = vld [vmem:[#allocation2 + $0x10] sm:$0xff]  ;;  %v39_v3 = vld [vmem:[#allocation2 + $0x18] sm:$0xff]  ;;  %v40_v4 = vmul.f32 %v36_v0, %v36_v0  ;;  %v41_v5 = vmul.f32 %v37_v1, %v37_v1  ;;  %v56_v20 = vld [vmem:[#allocation5] sm:$0xf]  ;;  %s112_s1 = sshll.u32 %s203_s0, 4  ;;  %s113_s1 = int_to_ptr.vmem [resolvable:$true] %s112_s1 }
  0x1b   :  { %v42_v6 = vmul.f32 %v38_v2, %v38_v2  ;;  %v43_v7 = vmul.f32 %v39_v3, %v39_v3  ;;  %v59_v15 = vshrl.u32 %v58_v14, 7  ;;  %s175_s19 = scalar_lea.vmem %s113_s1, 512  ;;  %p180_p11 = scmp.lt.s32.totalorder %s113_s1, %s113_s1 }
  0x1c   :  { %v44_v8 = vadd.f32 %v41_v5, %v40_v4  ;;  %p176_p10 = scmp.ne.s32.totalorder %s113_s1, %s175_s19  ;;  %p181_p12 = scmp.lt.s32.totalorder %s175_s19, %s175_s19 }
  0x1d   :  { %v60_v16 = vsub.s32 0, %v59_v15  ;;  %v64_v17 = vsub.s32 1, %v59_v15  ;;  %v68_v18 = vsub.s32 2, %v59_v15  ;;  %v72_v19 = vsub.s32 3, %v59_v15 }
  0x1e   :  { %v45_v9 = vadd.f32 %v44_v8, %v42_v6  ;;  %p182_p13 = por %p181_p12, %p180_p11 }
  0x1f   :  { %v61_v21 = vrot.slane %v56_v20, %v60_v16  ;;  %v65_v22 = vrot.slane %v56_v20, %v64_v17  ;;  %v69_v23 = vrot.slane %v56_v20, %v68_v18  ;;  %v73_v24 = vrot.slane %v56_v20, %v72_v19 }
  0x20   :  { %v46_v10 = vadd.f32 %v45_v9, %v43_v7  ;;  %p183_p0 = pnand %p182_p13, %p176_p10 }
  0x22   :  { %47 = vadd.xlane.f32.xlu0 %v46_v10 }
  0xab   :  { %v48_v11 = vpop.xlane.xlu0 %47 }
  0xac   :  { %v49_v12 = vmul.f32 0.001953125, %v48_v11 }
  0xae   :  { %v50_v13 = vadd.f32 1.1920929e-07, %v49_v12 }
  0xb0   :  { %125 = vrsqrt.f32 %v50_v13 }
  0xbd   :  { %v126_v25 = vpop.eup %125 }
  0xbe   :  { %v52_v26 = vmul.f32 %v126_v25, %v36_v0  ;;  %v53_v27 = vmul.f32 %v126_v25, %v37_v1  ;;  %v54_v28 = vmul.f32 %v126_v25, %v38_v2  ;;  %v55_v29 = vmul.f32 %v126_v25, %v39_v3 }
  0xc0   :  { %v78_v30 = vmul.f32 %v61_v21, %v52_v26  ;;  %v79_v31 = vmul.f32 %v65_v22, %v53_v27  ;;  %v80_v32 = vmul.f32 %v69_v23, %v54_v28  ;;  %v81_v33 = vmul.f32 %v73_v24, %v55_v29 }
  0xc2   :  { %v86_v34 = vmul.f32 0.70710677, %v78_v30  ;;  %v87_v35 = vmul.f32 0.70710677, %v79_v31  ;;  %v88_v36 = vmul.f32 0.70710677, %v80_v32 }
  0xc3   :  { %v89_v37 = vmul.f32 0.70710677, %v81_v33  ;;  %v82_v40 = vmul.f32 0.5, %v78_v30  ;;  %v83_v43 = vmul.f32 0.5, %v79_v31  ;;  %v84_v46 = vmul.f32 0.5, %v80_v32 }
  0xc4   :  { %127 = verf.f32 %v86_v34  ;;  %v85_v49 = vmul.f32 0.5, %v81_v33 }
  0xc5   :  { %129 = verf.f32 %v87_v35 }
  0xc6   :  { %131 = verf.f32 %v88_v36 }
  0xc7   :  { %133 = verf.f32 %v89_v37 }
  0xd1   :  { %v128_v38 = vpop.eup %127 }
  0xd2   :  { %v130_v39 = vpop.eup %129  ;;  %v94_v41 = vadd.f32 1.0, %v128_v38 }
  0xd3   :  { %v132_v42 = vpop.eup %131  ;;  %v95_v44 = vadd.f32 1.0, %v130_v39 }
  0xd4   :  { %v134_v45 = vpop.eup %133  ;;  %v96_v47 = vadd.f32 1.0, %v132_v42  ;;  %v98_v48 = vmul.f32 %v94_v41, %v82_v40 }
  0xd5   :  { %v97_v50 = vadd.f32 1.0, %v134_v45  ;;  %v99_v51 = vmul.f32 %v95_v44, %v83_v43 }
  0xd6   :  { %v100_v52 = vmul.f32 %v96_v47, %v84_v46  ;;  %102 = vst [vmem:[#allocation7] sm:$0xff] %v98_v48 }
  0xd7   :  { %v101_v53 = vmul.f32 %v97_v50, %v85_v49  ;;  %103 = vst [vmem:[#allocation7 + $0x8] sm:$0xff] %v99_v51 }
  0xd8   :  { %104 = vst [vmem:[#allocation7 + $0x10] sm:$0xff] %v100_v52 }
  0xd9   :  { %105 = vst [vmem:[#allocation7 + $0x18] sm:$0xff] %v101_v53 }
  0xda   :  { %186 = shalt.err (!%p183_p0)
}
  0xdb   :  { %115 = dma.vmem_to_hbm [thread:$0]  %s113_s1, 512, %s230_s2, [#allocation4]  }
  0xdc   :  { %199 = dma.done.wait [#allocation4], 512  }
  0xdd   :  { %200 = vsyncadd [#allocation4], 4294966784 }
  0xde   :  { %119 = vsyncpa [#allocation3], 1 }
  0xdf   :  { %120 = vsyncpa [#allocation6], 1 }
  0xe0   :  { %121 = vsyncpa [#allocation4], 1 }

</bundles_post_ra>
